<compile_context>
chip_gen: v7x
topology: tpu7x:2x2x1
jax: 0.10.0
libtpu: 0.0.40
codegen_flags: <defaults>
</compile_context>

<pallas_src>
import jax
import jax.numpy as jnp
from jax.experimental import pallas as pl
from jax.experimental.pallas import tpu as pltpu

HIDDEN = 64          # hidden width of fc1 / fc2
LANES = 128          # lane-padded width used for the hidden dim
IN_PAD = 16          # state_size padded to one bf16 sublane tile (state_size <= 16)
OUT_PAD = 8          # output columns written to HBM (action_size <= 8)

# Row offsets inside the packed bf16 weight slab [W_ROWS, 128] (16-row aligned).
OFF_W1 = 0                      # [16, 128]  (rows 0..S-1, cols 0..63 real)
OFF_W2 = OFF_W1 + IN_PAD        # 16   [128, 128] (rows/cols 0..63 real)
OFF_W3 = OFF_W2 + LANES         # 144  [128, 128] (rows 0..63, cols 0..A-1 real)
W_ROWS = OFF_W3 + LANES         # 272

# Rows inside the f32 bias slab [8, 128].
ROW_B1, ROW_B2, ROW_B3 = 0, 1, 2
B_ROWS = 8


def _round_up(n, m):
    return ((n + m - 1) // m) * m


def dqn_kernel(x_ref, w_ref, b_ref, out_ref):
    bf16 = jnp.bfloat16
    x = x_ref[...]                                            # [TB, 16] bf16

    # fc1 + relu  (bf16 MXU matmul, f32 accumulation, f32 bias/relu)
    w1 = w_ref[OFF_W1:OFF_W1 + IN_PAD, :]                     # [16, 128] bf16
    h1 = jnp.dot(x, w1, preferred_element_type=jnp.float32)
    h1 = jnp.maximum(h1 + b_ref[ROW_B1:ROW_B1 + 1, :], 0.0)   # [TB, 128] f32

    # fc2 + relu
    w2 = w_ref[OFF_W2:OFF_W2 + LANES, :]                      # [128, 128] bf16
    h2 = jnp.dot(h1.astype(bf16), w2, preferred_element_type=jnp.float32)
    h2 = jnp.maximum(h2 + b_ref[ROW_B2:ROW_B2 + 1, :], 0.0)   # [TB, 128] f32

    # fc3 (no activation); only the first OUT_PAD columns are written back.
    w3 = w_ref[OFF_W3:OFF_W3 + LANES, :]                      # [128, 128] bf16
    y = jnp.dot(h2.astype(bf16), w3, preferred_element_type=jnp.float32)
    y = y + b_ref[ROW_B3:ROW_B3 + 1, :]
    out_ref[...] = y[:, :OUT_PAD].astype(out_ref.dtype)       # [TB, 8]


def dqn_forward(x, w_slab, b_slab, *, action_size, tile_b=2048):
    """x: [B, state_size] float32. w_slab: [272,128] bf16. b_slab: [8,128] f32."""
    x = jnp.asarray(x, jnp.float32)
    B, S = x.shape
    if S > IN_PAD:
        raise ValueError(f"state_size {S} > {IN_PAD} not supported by packing")
    if action_size > OUT_PAD:
        raise ValueError(f"action_size {action_size} > {OUT_PAD} not supported")

    # Tile selection: avoid round-up-to-TB padding waste and (for batches big
    # enough) keep >= 2 grid steps so v7x's two TensorCores both get work.
    min_steps = 2 if B > 16 else 1
    steps = max(min_steps, pl.cdiv(B, tile_b))
    TB = _round_up(pl.cdiv(B, steps), 16)      # 16-row aligned (bf16 sublane tile)
    B_pad = steps * TB

    # Pad batch / features with zeros (inert through the MLP) and cast to bf16.
    xb = jnp.zeros((B_pad, IN_PAD), jnp.bfloat16)
    xb = xb.at[:B, :S].set(x.astype(jnp.bfloat16))

    out = pl.pallas_call(
        dqn_kernel,
        out_shape=jax.ShapeDtypeStruct((B_pad, OUT_PAD), jnp.float32),
        grid=(steps,),
        in_specs=[
            pl.BlockSpec((TB, IN_PAD), lambda i: (i, 0)),       # batch tile of x
            pl.BlockSpec((W_ROWS, LANES), lambda i: (0, 0)),    # resident weights
            pl.BlockSpec((B_ROWS, LANES), lambda i: (0, 0)),    # resident biases
        ],
        out_specs=pl.BlockSpec((TB, OUT_PAD), lambda i: (i, 0)),
        compiler_params=pltpu.CompilerParams(
            dimension_semantics=("parallel",)),
    )(xb, w_slab, b_slab)
    return out[:B, :action_size]


def init_params(key, state_size, action_size, hidden=HIDDEN):
    """PyTorch nn.Linear-style init (uniform +/- 1/sqrt(fan_in)).
    Weights stored as [in, out] (PyTorch [out, in] transposed)."""
    keys = jax.random.split(key, 6)

    def linear(kw, kb, fan_in, fan_out):
        bound = 1.0 / jnp.sqrt(jnp.float32(fan_in))
        w = jax.random.uniform(kw, (fan_in, fan_out), jnp.float32, -bound, bound)
        b = jax.random.uniform(kb, (fan_out,), jnp.float32, -bound, bound)
        return w, b

    w1, b1 = linear(keys[0], keys[1], state_size, hidden)
    w2, b2 = linear(keys[2], keys[3], hidden, hidden)
    w3, b3 = linear(keys[4], keys[5], hidden, action_size)
    return {"w1": w1, "b1": b1, "w2": w2, "b2": b2, "w3": w3, "b3": b3}


def pack_params(params):
    """Pack weights into one bf16 slab [272,128] and biases into an f32 slab [8,128]."""
    w1, b1 = params["w1"], params["b1"]
    w2, b2 = params["w2"], params["b2"]
    w3, b3 = params["w3"], params["b3"]
    S, H = w1.shape
    A = w3.shape[1]
    assert S <= IN_PAD, "state_size must be <= 16"
    assert H == HIDDEN and w2.shape == (HIDDEN, HIDDEN) and w3.shape[0] == HIDDEN
    assert A <= OUT_PAD, "action_size must be <= 8"

    w_slab = jnp.zeros((W_ROWS, LANES), jnp.bfloat16)
    w_slab = w_slab.at[OFF_W1:OFF_W1 + S, :H].set(w1.astype(jnp.bfloat16))
    w_slab = w_slab.at[OFF_W2:OFF_W2 + H, :H].set(w2.astype(jnp.bfloat16))
    w_slab = w_slab.at[OFF_W3:OFF_W3 + H, :A].set(w3.astype(jnp.bfloat16))

    b_slab = jnp.zeros((B_ROWS, LANES), jnp.float32)
    b_slab = b_slab.at[ROW_B1, :H].set(b1.astype(jnp.float32))
    b_slab = b_slab.at[ROW_B2, :H].set(b2.astype(jnp.float32))
    b_slab = b_slab.at[ROW_B3, :A].set(b3.astype(jnp.float32))
    return w_slab, b_slab


def dqn_reference_f32(x, p):
    """Pure f32 reference (PyTorch semantics)."""
    h1 = jnp.maximum(x @ p["w1"] + p["b1"], 0.0)
    h2 = jnp.maximum(h1 @ p["w2"] + p["b2"], 0.0)
    return h2 @ p["w3"] + p["b3"]


def dqn_reference_bf16(x, p):
    """Mirrors the kernel numerics: bf16 MXU matmuls, f32 accum, f32 bias/relu."""
    bf = lambda a: a.astype(jnp.bfloat16)
    dot = lambda a, b: jnp.dot(bf(a), bf(b), preferred_element_type=jnp.float32)
    h1 = jnp.maximum(dot(x, p["w1"]) + p["b1"], 0.0)
    h2 = jnp.maximum(dot(h1, p["w2"]) + p["b2"], 0.0)
    return dot(h2, p["w3"]) + p["b3"]


if __name__ == "__main__":
    # CartPole-v1: state_size = 4, action_size = 2.
    state_size, action_size = 4, 2

    key = jax.random.PRNGKey(0)
    k_x, k_x2, k_p = jax.random.split(key, 3)

    params = init_params(k_p, state_size, action_size)
    w_slab, b_slab = pack_params(params)

    # Small inference-style batch (grid = 1 step).
    x = jax.random.normal(k_x, (2, state_size), dtype=jnp.float32)
    out = jax.block_until_ready(
        dqn_forward(x, w_slab, b_slab, action_size=action_size))
    assert out.shape == (2, action_size), out.shape
    assert jnp.allclose(out, dqn_reference_bf16(x, params), atol=5e-3, rtol=5e-3)
    assert jnp.allclose(out, dqn_reference_f32(x, params), atol=5e-2, rtol=5e-2)

    # Replay-buffer-style batch exercising batch tiling + padding (grid = 2 steps).
    xb = jax.random.normal(k_x2, (300, state_size), dtype=jnp.float32)
    outb = jax.block_until_ready(
        dqn_forward(xb, w_slab, b_slab, action_size=action_size))
    assert outb.shape == (300, action_size), outb.shape
    assert jnp.allclose(outb, dqn_reference_bf16(xb, params), atol=5e-3, rtol=5e-3)
    assert jnp.allclose(outb, dqn_reference_f32(xb, params), atol=5e-2, rtol=5e-2)

    print("KERNEL_OK")
</pallas_src>

<mosaic_0001>
module attributes {stable_mosaic.version = 11 : i64} {
  func.func @dqn_kernel(%arg0: i32, %arg1: memref<16x16xbf16, #tpu.memory_space<vmem>>, %arg2: memref<272x128xbf16, #tpu.memory_space<vmem>>, %arg3: memref<8x128xf32, #tpu.memory_space<vmem>>, %arg4: memref<16x8xf32, #tpu.memory_space<vmem>>) attributes {dimension_semantics = [#tpu.dimension_semantics<parallel>], iteration_bounds = array<i64: 1>, scalar_prefetch = 0 : i64, scratch_operands = 0 : i64, tpu.core_type = #tpu.core_type<tc>, window_params = [{transform_indices = @transform_0, window_bounds = array<i64: 16, 16>}, {pipeline_mode = #tpu.pipeline_mode<synchronous>, transform_indices = @transform_1, window_bounds = array<i64: 272, 128>}, {pipeline_mode = #tpu.pipeline_mode<synchronous>, transform_indices = @transform_2, window_bounds = array<i64: 8, 128>}, {transform_indices = @transform_3, window_bounds = array<i64: 16, 8>}]} {
    %c0 = arith.constant 0 : index
    %c0_0 = arith.constant 0 : index
    %0 = vector.load %arg1[%c0, %c0_0] : memref<16x16xbf16, #tpu.memory_space<vmem>>, vector<16x16xbf16>
    %c0_1 = arith.constant 0 : index
    %c0_2 = arith.constant 0 : index
    %1 = vector.load %arg2[%c0_1, %c0_2] : memref<272x128xbf16, #tpu.memory_space<vmem>>, vector<16x128xbf16>
    %cst = arith.constant dense<0.000000e+00> : vector<16x128xf32>
    %2 = tpu.matmul %0, %1, %cst {dimension_numbers = #tpu.dot_dimension_numbers<[1], [0], [0], [1], [0, 0, 1, 1], [], []>} : vector<16x16xbf16>, vector<16x128xbf16>, vector<16x128xf32> -> vector<16x128xf32>
    %c0_3 = arith.constant 0 : index
    %c0_4 = arith.constant 0 : index
    %3 = vector.load %arg3[%c0_3, %c0_4] : memref<8x128xf32, #tpu.memory_space<vmem>>, vector<1x128xf32>
    %4 = vector.broadcast %3 : vector<1x128xf32> to vector<16x128xf32>
    %5 = arith.addf %2, %4 : vector<16x128xf32>
    %cst_5 = arith.constant 0.000000e+00 : f32
    %6 = vector.broadcast %cst_5 : f32 to vector<16x128xf32>
    %7 = arith.maximumf %5, %6 : vector<16x128xf32>
    %c16 = arith.constant 16 : index
    %c0_6 = arith.constant 0 : index
    %8 = vector.load %arg2[%c16, %c0_6] : memref<272x128xbf16, #tpu.memory_space<vmem>>, vector<128x128xbf16>
    %9 = arith.truncf %7 : vector<16x128xf32> to vector<16x128xbf16>
    %cst_7 = arith.constant dense<0.000000e+00> : vector<16x128xf32>
    %10 = tpu.matmul %9, %8, %cst_7 {dimension_numbers = #tpu.dot_dimension_numbers<[1], [0], [0], [1], [0, 0, 1, 1], [], []>} : vector<16x128xbf16>, vector<128x128xbf16>, vector<16x128xf32> -> vector<16x128xf32>
    %c1 = arith.constant 1 : index
    %c0_8 = arith.constant 0 : index
    %11 = vector.load %arg3[%c1, %c0_8] : memref<8x128xf32, #tpu.memory_space<vmem>>, vector<1x128xf32>
    %12 = vector.broadcast %11 : vector<1x128xf32> to vector<16x128xf32>
    %13 = arith.addf %10, %12 : vector<16x128xf32>
    %cst_9 = arith.constant 0.000000e+00 : f32
    %14 = vector.broadcast %cst_9 : f32 to vector<16x128xf32>
    %15 = arith.maximumf %13, %14 : vector<16x128xf32>
    %c144 = arith.constant 144 : index
    %c0_10 = arith.constant 0 : index
    %16 = vector.load %arg2[%c144, %c0_10] : memref<272x128xbf16, #tpu.memory_space<vmem>>, vector<128x128xbf16>
    %17 = arith.truncf %15 : vector<16x128xf32> to vector<16x128xbf16>
    %cst_11 = arith.constant dense<0.000000e+00> : vector<16x128xf32>
    %18 = tpu.matmul %17, %16, %cst_11 {dimension_numbers = #tpu.dot_dimension_numbers<[1], [0], [0], [1], [0, 0, 1, 1], [], []>} : vector<16x128xbf16>, vector<128x128xbf16>, vector<16x128xf32> -> vector<16x128xf32>
    %c2 = arith.constant 2 : index
    %c0_12 = arith.constant 0 : index
    %19 = vector.load %arg3[%c2, %c0_12] : memref<8x128xf32, #tpu.memory_space<vmem>>, vector<1x128xf32>
    %20 = vector.broadcast %19 : vector<1x128xf32> to vector<16x128xf32>
    %21 = arith.addf %18, %20 : vector<16x128xf32>
    %22 = vector.extract_strided_slice %21 {offsets = [0, 0], sizes = [16, 8], strides = [1, 1]} : vector<16x128xf32> to vector<16x8xf32>
    %c0_13 = arith.constant 0 : index
    %c0_14 = arith.constant 0 : index
    %23 = vector.load %arg4[%c0_13, %c0_14] : memref<16x8xf32, #tpu.memory_space<vmem>>, vector<16x8xf32>
    tpu.vector_store %arg4[%c0_13, %c0_14], %22 {strides = array<i32>} : memref<16x8xf32, #tpu.memory_space<vmem>>, vector<16x8xf32>,
    return
  }
  func.func @transform_0(%arg0: i32) -> (i32, i32) {
    %c0_i32 = arith.constant 0 : i32
    %c0_i32_0 = arith.constant 0 : i32
    return %arg0, %c0_i32 : i32, i32
  }
  func.func @transform_1(%arg0: i32) -> (i32, i32) {
    %c0_i32 = arith.constant 0 : i32
    %c0_i32_0 = arith.constant 0 : i32
    %c0_i32_1 = arith.constant 0 : i32
    return %c0_i32, %c0_i32_0 : i32, i32
  }
  func.func @transform_2(%arg0: i32) -> (i32, i32) {
    %c0_i32 = arith.constant 0 : i32
    %c0_i32_0 = arith.constant 0 : i32
    %c0_i32_1 = arith.constant 0 : i32
    return %c0_i32, %c0_i32_0 : i32, i32
  }
  func.func @transform_3(%arg0: i32) -> (i32, i32) {
    %c0_i32 = arith.constant 0 : i32
    %c0_i32_0 = arith.constant 0 : i32
    return %arg0, %c0_i32 : i32, i32
  }
}

</mosaic_0001>

<bundles_post_ra>
// kernel: tpu_custom_call.1
= control target key start
LH: loop header
LB: loop body
LE: loop exit
PB: predicated region body
PF: predicated region fallthrough
CT: control target
= control target key end

     0   :  { %8 = vsyncpa [#allocation3], 0  ;;  %s633_s0 = inlined_call_operand.hbm [shape: bf16[16,16], index: 0, kind: input, shape index: {}]   ;;  %s634_s1 = inlined_call_operand.hbm [shape: bf16[272,128], index: 1, kind: input, shape index: {}]   ;;  %s635_s2 = inlined_call_operand.hbm [shape: f32[8,128], index: 2, kind: input, shape index: {}]   ;;  %s636_s3 = inlined_call_operand.vmem [shape: f32[16,8], index: 3, kind: output, shape index: {}]  }
   0x1   :  { %9 = vsyncpa [#allocation5], 0  ;;  %s537_s12 = smov [#allocation4]   ;;  %s538_s14 = smov [#allocation2]  }
   0x2   :  { %s27_s13 = sshll.u32 %s537_s12, 4  ;;  %s15_s15 = sshll.u32 %s538_s14, 4  ;;  %s28_s13 = int_to_ptr.vmem [resolvable:$true] %s27_s13  ;;  %s564_s15 = int_to_ptr.vmem [resolvable:$true] %s15_s15 }
   0x3   :  { %s467_s18 = scalar_lea.hbm %s634_s1, 2176 }
   0x4   :  { %p468_p0 = scmp.ne.s32.totalorder %s634_s1, %s467_s18  ;;  %p471_p1 = scmp.lt.u32.totalorder %s467_s18, %s634_s1 }
   0x6   :  { %p473_p2 = pnand %p471_p1, %p468_p0 }
   0x8   :  { %476 = shalt.err (!%p473_p2)
}
   0x9   :  { %s477_s23 = scalar_lea.vmem %s28_s13, 2176  ;;  %p482_p4 = scmp.lt.s32.totalorder %s28_s13, %s28_s13 }
   0xa   :  { %p478_p3 = scmp.ne.s32.totalorder %s28_s13, %s477_s23  ;;  %p483_p5 = scmp.lt.s32.totalorder %s477_s23, %s477_s23 }
   0xc   :  { %p484_p6 = por %p483_p5, %p482_p4 }
   0xe   :  { %p485_p7 = pnand %p484_p6, %p478_p3 }
  0x10   :  { %488 = shalt.err (!%p485_p7)
}
  0x11   :  { %s539_s24 = smov 64   ;;  %s540_s25 = smov 4  }
  0x12   :  { %33 = dma.hbm_to_vmem [thread:$0]  %s634_s1, 2176, %s28_s13, [#allocation5], %s539_s24, %s539_s24, %s540_s25  }
  0x13   :  { %s489_s30 = scalar_lea.hbm %s633_s0, 128 }
  0x14   :  { %p490_p8 = scmp.ne.s32.totalorder %s633_s0, %s489_s30  ;;  %p493_p9 = scmp.lt.u32.totalorder %s489_s30, %s633_s0 }
  0x16   :  { %p495_p10 = pnand %p493_p9, %p490_p8 }
  0x18   :  { %498 = shalt.err (!%p495_p10)
}
  0x19   :  { %s499_s8 = scalar_lea.vmem %s564_s15, 128  ;;  %p504_p12 = scmp.lt.s32.totalorder %s564_s15, %s564_s15 }
  0x1a   :  { %p500_p11 = scmp.ne.s32.totalorder %s564_s15, %s499_s8  ;;  %p505_p13 = scmp.lt.s32.totalorder %s499_s8, %s499_s8 }
  0x1c   :  { %p506_p0 = por %p505_p13, %p504_p12 }
  0x1e   :  { %p507_p1 = pnand %p506_p0, %p500_p11 }
  0x20   :  { %510 = shalt.err (!%p507_p1)
}
  0x21   :  { %21 = dma.hbm_to_vmem [thread:$0]  %s633_s0, 128, %s564_s15, [#allocation3], %s539_s24, %s539_s24, %s540_s25  }
  0x22   :  { %s541_s10 = smov [#allocation6]   ;;  %s511_s14 = scalar_lea.hbm %s635_s2, 128 }
  0x23   :  { %s40_s11 = sshll.u32 %s541_s10, 4  ;;  %p512_p2 = scmp.ne.s32.totalorder %s635_s2, %s511_s14  ;;  %s41_s11 = int_to_ptr.vmem [resolvable:$true] %s40_s11 }
  0x24   :  { %p515_p3 = scmp.lt.u32.totalorder %s511_s14, %s635_s2 }
  0x26   :  { %p517_p4 = pnand %p515_p3, %p512_p2 }
  0x28   :  { %520 = shalt.err (!%p517_p4)
}
  0x29   :  { %s521_s20 = scalar_lea.vmem %s41_s11, 128  ;;  %p526_p6 = scmp.lt.s32.totalorder %s41_s11, %s41_s11 }
  0x2a   :  { %p522_p5 = scmp.ne.s32.totalorder %s41_s11, %s521_s20  ;;  %p527_p7 = scmp.lt.s32.totalorder %s521_s20, %s521_s20 }
  0x2c   :  { %p528_p8 = por %p527_p7, %p526_p6 }
  0x2e   :  { %p529_p9 = pnand %p528_p8, %p522_p5 }
  0x30   :  { %532 = shalt.err (!%p529_p9)
}
  0x31   :  { %43 = dma.hbm_to_vmem [thread:$0]  %s635_s2, 128, %s41_s11, [#allocation5]  }
  0x32   :  { %533 = dma.done.wait [#allocation3], 128  }
  0x33   :  { %534 = vsyncadd [#allocation3], 4294967168 }
  0x34   :  { %535 = dma.done.wait [#allocation5], 2304  }
  0x35   :  { %536 = vsyncadd [#allocation5], 4294964992  ;;  %v542_v0 = vmov 0.0   ;;  %vm543_vm0 = vmmov 0   ;;  %v449_v1 = vld [vmem:[#allocation4] sm:$0xff]   ;;  %v450_v2 = vld [vmem:[#allocation2] sm:$0xff]  }
  0x36   :  { %396 = vmatprep.subr.bf16.mxu0 %v542_v0  ;;  %398 = vmatprep.mubr.msk.bf16.mxu0 %vm543_vm0, %v542_v0  ;;  %vm74_vm1 = vcmask 130048   ;;  %v451_v3 = vld [vmem:[#allocation4 + $0x8] sm:$0xff]   ;;  %v452_v4 = vld [vmem:[#allocation4 + $0x10] sm:$0xff]   ;;  %v453_v5 = vld [vmem:[#allocation4 + $0x18] sm:$0xff]   ;;  %vm345_vm2 = vcmask 64512  }
  0x37   :  { %402 = vmatprep.subr.bf16.mxu1 %v542_v0  ;;  %418 = vmatprep.mubr.msk.bf16.mxu1 %vm543_vm0, %v542_v0  ;;  %v454_v6 = vld [vmem:[#allocation4 + $0x20] sm:$0xff]   ;;  %v455_v7 = vld [vmem:[#allocation4 + $0x28] sm:$0xff]   ;;  %v456_v8 = vld [vmem:[#allocation4 + $0x30] sm:$0xff]  }
  0x38   :  { %397 = vmatpush3.bf16.msra.mxu0 %v449_v1  ;;  %403 = vmatpush3.bf16.msra.mxu1 %v451_v3  ;;  %v457_v9 = vld [vmem:[#allocation4 + $0x38] sm:$0xff]   ;;  %v458_v10 = vld [vmem:[#allocation4 + $0x40] sm:$0xff]   ;;  %v459_v11 = vld [vmem:[#allocation4 + $0x48] sm:$0xff]  }
  0x39   :  { %422 = vmatprep.subr.bf16.mxu0 %v542_v0  ;;  %404 = vmatprep.subr.bf16.mxu1 %v542_v0  ;;  %v460_v12 = vld [vmem:[#allocation4 + $0x50] sm:$0xff]   ;;  %v461_v13 = vld [vmem:[#allocation4 + $0x58] sm:$0xff]   ;;  %v462_v14 = vld [vmem:[#allocation4 + $0x60] sm:$0xff]  }
  0x3a   :  { %v463_v15 = vld [vmem:[#allocation4 + $0x68] sm:$0xff]   ;;  %v464_v16 = vld [vmem:[#allocation4 + $0x70] sm:$0xff]   ;;  %v465_v27 = vld [vmem:[#allocation4 + $0x78] sm:$0xff]  }
  0x3b   :  { %399 = vmatmul.mubr.msk.bf16.vlgmr.msra.gmra.mrb[0].mxu0 %vm74_vm1, %v450_v2  ;;  %v354_v17 = vld [vmem:[#allocation6] ss:$0 sm:$0xff]  ;;  %v466_v28 = vld [vmem:[#allocation4 + $0x80] sm:$0xff]   ;;  %v358_v29 = vld [vmem:[#allocation6 + $0x1] ss:$0 sm:$0xff] }
  0x3c   :  { %438 = vmatprep.mubr.msk.bf16.mxu0 %vm543_vm0, %v542_v0  ;;  %405 = vmatpush3.bf16.msra.mxu1 %v452_v4  ;;  %v367_v39 = vld [vmem:[#allocation6 + $0x2] ss:$0 sm:$0xff] }
  0x3d   :  { %406 = vmatprep.subr.bf16.mxu1 %v542_v0  ;;  %423 = vmatpush3.bf16.msra.mxu0 %v459_v11 }
  0x3e   :  { %424 = vmatprep.subr.bf16.mxu0 %v542_v0 }
  0x40   :  { %407 = vmatpush3.bf16.msra.mxu1 %v453_v5 }
  0x41   :  { %408 = vmatprep.subr.bf16.mxu1 %v542_v0  ;;  %425 = vmatpush3.bf16.msra.mxu0 %v460_v12 }
  0x42   :  { %426 = vmatprep.subr.bf16.mxu0 %v542_v0 }
  0x44   :  { %409 = vmatpush3.bf16.msra.mxu1 %v454_v6 }
  0x45   :  { %410 = vmatprep.subr.bf16.mxu1 %v542_v0  ;;  %427 = vmatpush3.bf16.msra.mxu0 %v461_v13 }
  0x46   :  { %428 = vmatprep.subr.bf16.mxu0 %v542_v0 }
  0x48   :  { %411 = vmatpush3.bf16.msra.mxu1 %v455_v7 }
  0x49   :  { %412 = vmatprep.subr.bf16.mxu1 %v542_v0  ;;  %429 = vmatpush3.bf16.msra.mxu0 %v462_v14 }
  0x4a   :  { %430 = vmatprep.subr.bf16.mxu0 %v542_v0 }
  0x4c   :  { %413 = vmatpush3.bf16.msra.mxu1 %v456_v8 }
  0x4d   :  { %414 = vmatprep.subr.bf16.mxu1 %v542_v0  ;;  %431 = vmatpush3.bf16.msra.mxu0 %v463_v15 }
  0x4e   :  { %432 = vmatprep.subr.bf16.mxu0 %v542_v0 }
  0x50   :  { %415 = vmatpush3.bf16.msra.mxu1 %v457_v9 }
  0x51   :  { %416 = vmatprep.subr.bf16.mxu1 %v542_v0  ;;  %433 = vmatpush3.bf16.msra.mxu0 %v464_v16 }
  0x52   :  { %434 = vmatprep.subr.bf16.mxu0 %v542_v0 }
  0x54   :  { %417 = vmatpush3.bf16.msra.mxu1 %v458_v10 }
  0x55   :  { %435 = vmatpush3.bf16.msra.mxu0 %v465_v27 }
  0x56   :  { %436 = vmatprep.subr.bf16.mxu0 %v542_v0 }
  0x59   :  { %437 = vmatpush3.bf16.msra.mxu0 %v466_v28 }
 0x10e   :  { %v112_v18 = vpop.f32.mrb[0].mxu0 }
 0x10f   :  { %v113_v19 = vadd.f32 %v354_v17, %v112_v18  ;;  %v400_v20 = vpop.f32.mrb[1].mxu0 }
 0x110   :  { %v115_v21 = vpop.f32.mrb[2].mxu0 }
 0x111   :  { %v116_v22 = vadd.f32 %v354_v17, %v115_v21  ;;  %v401_v23 = vpop.f32.mrb[3].mxu0  ;;  %v119_v24 = vmax.f32 %v113_v19, 0.0 }
 0x113   :  { %v120_v25 = vmax.f32 %v116_v22, 0.0 }
 0x115   :  { %v137_v26 = vpack.c.bf16 %v120_v25, %v119_v24 }
 0x117   :  { %419 = vmatmul.mubr.bf16.vlgmr.msra.gmra.mrb[0].mxu1 %v137_v26 }
 0x1ea   :  { %v225_v30 = vpop.f32.mrb[0].mxu1 }
 0x1eb   :  { %v226_v31 = vadd.f32 %v358_v29, %v225_v30  ;;  %v420_v32 = vpop.f32.mrb[1].mxu1 }
 0x1ec   :  { %v228_v33 = vpop.f32.mrb[2].mxu1 }
 0x1ed   :  { %v229_v34 = vadd.f32 %v358_v29, %v228_v33  ;;  %v421_v35 = vpop.f32.mrb[3].mxu1  ;;  %v232_v36 = vmax.f32 %v226_v31, 0.0 }
 0x1ef   :  { %v233_v37 = vmax.f32 %v229_v34, 0.0 }
 0x1f1   :  { %v250_v38 = vpack.c.bf16 %v233_v37, %v232_v36 }
 0x1f3   :  { %439 = vmatmul.mubr.bf16.vlgmr.msra.gmra.mrb[4].mxu0 %v250_v38 }
 0x2c6   :  { %v338_v40 = vpop.f32.mrb[4].mxu0 }
 0x2c7   :  { %v339_v41 = vadd.f32 %v367_v39, %v338_v40  ;;  %v440_v42 = vpop.f32.mrb[5].mxu0 }
 0x2c8   :  { %v341_v43 = vpop.f32.mrb[6].mxu0 }
 0x2c9   :  { %346 = vst.msk [vmem:[%s636_s3] sm:$0xff] %vm345_vm2, %v339_v41  ;;  %v342_v44 = vadd.f32 %v367_v39, %v341_v43  ;;  %v441_v45 = vpop.f32.mrb[7].mxu0 }
 0x2cb   :  { %347 = vst.msk [vmem:[%s636_s3 + $0x8] sm:$0xff] %vm345_vm2, %v342_v44 }
 0x2cc   :  { %352 = vsyncpa [#allocation3], 1 }
 0x2cd   :  { %353 = vsyncpa [#allocation5], 1 }

</bundles_post_ra>
